<compile_context>
chip_gen: v7x
topology: tpu7x:2x2x1
jax: 0.10.0
libtpu: 0.0.40
codegen_flags: <defaults>
</compile_context>

<pallas_src>
import numpy as np
import jax
import jax.numpy as jnp
from jax.experimental import pallas as pl
from jax.experimental.pallas import tpu as pltpu


# ----------------------------- constant folding ----------------------------- #

def _interp_matrix(l_in: int, n_out: int) -> np.ndarray:
    """Dense M such that M @ x == F.interpolate(x[None,None], size=n_out,
    mode='linear', align_corners=False) for a length-l_in signal."""
    scale = l_in / n_out
    m = np.zeros((n_out, l_in), dtype=np.float32)
    for i in range(n_out):
        src = (i + 0.5) * scale - 0.5
        if src < 0.0:                       # PyTorch clamps negative src to 0
            src = 0.0
        i0 = min(int(np.floor(src)), l_in - 1)
        i1 = i0 + 1 if i0 < l_in - 1 else i0
        w1 = src - i0
        m[i, i0] += 1.0 - w1
        m[i, i1] += w1
    return m


# --------------------------------- kernel ----------------------------------- #

def _fused_kernel(z_ref, w_ref, b_ref, o_ref):
    # z streamed in its native dtype (tiny) and cast in-kernel so the MXU sees
    # bf16 x bf16 with f32 accumulation (fast path on v5e/v6e/v7x).
    z = z_ref[...].astype(w_ref.dtype)
    acc = jnp.dot(z, w_ref[...], preferred_element_type=jnp.float32)
    o_ref[...] = (acc + b_ref[...]).astype(o_ref.dtype)


# ------------------------------ sizing helpers ------------------------------ #

def _tpu_vmem_capacity_bytes() -> int:
    try:
        return int(pltpu.get_tpu_info().vmem_capacity_bytes)
    except Exception:
        return 64 << 20            # conservative fallback (v7x per-TC physical VMEM)


def _vmem_needed(b, l_in, block_n, n_blocks, *,
                 w_bytes=2, z_bytes=4, o_bytes=4, bias_bytes=4) -> int:
    """Per-generation VMEM footprint of one pipeline stage (all tiles)."""
    bufs = 2 if n_blocks > 1 else 1          # BlockSpec double-buffers only when the grid loops
    return bufs * (b * l_in * z_bytes        # z tile
                   + l_in * block_n * w_bytes  # fused-weight tile (bf16)
                   + block_n * bias_bytes      # bias tile
                   + b * block_n * o_bytes)    # output tile


def _pick_block_n(n_fused, l_in, b, budget):
    """Largest lane-dense column block whose buffered footprint fits the VMEM budget.
    Prefer a single block (no grid) -- the grid is sequential, ~0.35 us/step overhead."""
    if _vmem_needed(b, l_in, n_fused, 1) <= budget:
        return n_fused, 1
    if n_fused % 128 != 0:
        # cannot tile lane-dense; fall back to full extent (may exceed budget)
        return n_fused, 1
    best = 128
    for blk in range(128, n_fused, 128):
        if n_fused % blk == 0 and _vmem_needed(b, l_in, blk, n_fused // blk) <= budget:
            best = blk
    return best, n_fused // best


# ------------------------------ module factory ------------------------------ #

def make_decoder_upsample_block(w, b, *, hidden_size, patch_size, output_size,
                                out_channels, l_in):
    """Precompute fused weight/bias once; return a jitted forward(z)."""
    T = (output_size * output_size) // (patch_size ** 2)
    p2c = patch_size * patch_size * out_channels
    n_out = T * p2c                           # interpolation_size
    n_fused = T * hidden_size                 # lane-dense output width

    # Fold interpolation into the linear weight:
    #   out[b,t,h] = sum_l z[b,l] * (sum_p M[t*p2c+p, l] * W[h,p]) + bias[h]
    m = _interp_matrix(l_in, n_out).reshape(T, p2c, l_in)            # (T, P, L)
    w_np = np.asarray(w, np.float32)                                 # (H, P)
    w_fused_f32 = np.einsum('tpl,hp->lth', m, w_np).reshape(l_in, n_fused)
    b_fused_f32 = np.tile(np.asarray(b, np.float32), T).reshape(1, n_fused)

    w_fused = jnp.asarray(w_fused_f32, jnp.bfloat16)                 # (L, T*H) bf16
    b_fused = jnp.asarray(b_fused_f32, jnp.float32)                  # (1, T*H) f32

    vmem_cap = _tpu_vmem_capacity_bytes()
    vmem_budget = (vmem_cap * 3) // 4                                # leave compiler headroom

    def forward(z):
        B = z.shape[0]
        # Pad batch to a full f32 sublane (8): unmasked vld/vst and fuller MXU rows.
        B_pad = ((B + 7) // 8) * 8
        if B_pad != B:
            z = jnp.pad(z, ((0, B_pad - B), (0, 0)))

        block_n, n_blocks = _pick_block_n(n_fused, l_in, B_pad, vmem_budget)
        needed = _vmem_needed(B_pad, l_in, block_n, n_blocks)
        vmem_limit = int(min((vmem_cap * 9) // 10, max(4 << 20, 2 * needed)))

        cost = pl.CostEstimate(
            flops=2 * B_pad * l_in * n_fused,
            transcendentals=0,
            bytes_accessed=(B_pad * l_in * z.dtype.itemsize
                            + l_in * n_fused * 2        # bf16 weight
                            + n_fused * 4               # bias
                            + B_pad * n_fused * 4))     # f32 output

        out_shape = jax.ShapeDtypeStruct((B_pad, n_fused), jnp.float32)

        if n_blocks == 1:
            # Whole problem resident in VMEM: no grid, no pipeline overhead.
            out = pl.pallas_call(
                _fused_kernel,
                out_shape=out_shape,
                in_specs=[pl.BlockSpec((B_pad, l_in), lambda: (0, 0)),
                          pl.BlockSpec((l_in, n_fused), lambda: (0, 0)),
                          pl.BlockSpec((1, n_fused), lambda: (0, 0))],
                out_specs=pl.BlockSpec((B_pad, n_fused), lambda: (0, 0)),
                compiler_params=pltpu.CompilerParams(vmem_limit_bytes=vmem_limit),
                cost_estimate=cost,
            )(z, w_fused, b_fused)
        else:
            # Tile the lane (N) axis; "parallel" lets v7x's two TCs stream
            # disjoint weight columns. Harmless on single-TC v5e/v6e.
            out = pl.pallas_call(
                _fused_kernel,
                out_shape=out_shape,
                grid=(n_blocks,),
                in_specs=[pl.BlockSpec((B_pad, l_in), lambda j: (0, 0)),
                          pl.BlockSpec((l_in, block_n), lambda j: (0, j)),
                          pl.BlockSpec((1, block_n), lambda j: (0, j))],
                out_specs=pl.BlockSpec((B_pad, block_n), lambda j: (0, j)),
                compiler_params=pltpu.CompilerParams(
                    dimension_semantics=("parallel",),
                    vmem_limit_bytes=vmem_limit),
                cost_estimate=cost,
            )(z, w_fused, b_fused)

        if B_pad != B:
            out = out[:B]
        # column index t*H + h  ->  (B, T, H) row-major view (matches PyTorch)
        return out.reshape(B, T, hidden_size)

    return jax.jit(forward)


# ------------------------------- reference ---------------------------------- #

def _reference(z, w, b, T, p2c, hidden):
    """Pure NumPy reference reproducing the PyTorch forward pass (f32)."""
    z = np.asarray(z, np.float32)
    B, l_in = z.shape
    n_out = T * p2c
    scale = l_in / n_out
    i = np.arange(n_out)
    src = np.maximum((i + 0.5) * scale - 0.5, 0.0)
    i0 = np.minimum(np.floor(src).astype(np.int64), l_in - 1)
    i1 = np.where(i0 < l_in - 1, i0 + 1, i0)
    w1 = (src - i0).astype(np.float32)
    w0 = 1.0 - w1
    z_up = w0[None, :] * z[:, i0] + w1[None, :] * z[:, i1]
    x = z_up.reshape(B * T, p2c)
    out = x @ np.asarray(w, np.float32).T + np.asarray(b, np.float32)[None]
    return out.reshape(B, T, hidden)


if __name__ == "__main__":
    # DecoderUpsampleBlock(hidden_size=32, patch_size=2, output_size=8, out_channels=4)
    #   -> T = 16, p2c = 16, n_fused = T*H = 512
    hidden_size, patch_size, output_size, out_channels = 32, 2, 8, 4
    T = (output_size ** 2) // (patch_size ** 2)          # 16
    p2c = patch_size * patch_size * out_channels         # 16

    B, L_in = 2, 64
    key = jax.random.PRNGKey(0)
    k1, k2, k3 = jax.random.split(key, 3)

    z = jax.random.normal(k1, (B, L_in), dtype=jnp.float32)
    # nn.Linear(p2c, hidden_size): weight (hidden, p2c), bias (hidden,)
    bound = 1.0 / np.sqrt(p2c)
    w = jax.random.uniform(k2, (hidden_size, p2c), jnp.float32, -bound, bound)
    b = jax.random.uniform(k3, (hidden_size,), jnp.float32, -bound, bound)

    forward = make_decoder_upsample_block(
        w, b, hidden_size=hidden_size, patch_size=patch_size,
        output_size=output_size, out_channels=out_channels, l_in=L_in)

    out = jax.block_until_ready(forward(z))

    assert out.shape == (B, T, hidden_size), out.shape
    ref = _reference(z, w, b, T, p2c, hidden_size)
    # bf16 fused weight + bf16 MXU inputs (f32 accum): relaxed tolerance vs f32 ref.
    np.testing.assert_allclose(np.asarray(out), ref, rtol=5e-2, atol=2e-2)
    print("KERNEL_OK")
</pallas_src>

<mosaic_0001>
module attributes {stable_mosaic.version = 11 : i64} {
  func.func @_fused_kernel(%arg0: memref<8x64xf32, #tpu.memory_space<vmem>>, %arg1: memref<64x512xbf16, #tpu.memory_space<vmem>>, %arg2: memref<1x512xf32, #tpu.memory_space<vmem>>, %arg3: memref<8x512xf32, #tpu.memory_space<vmem>>) attributes {dimension_semantics = [], scalar_prefetch = 0 : i64, scratch_operands = 0 : i64, tpu.core_type = #tpu.core_type<tc>} {
    %c0 = arith.constant 0 : index
    %c0_0 = arith.constant 0 : index
    %0 = vector.load %arg0[%c0, %c0_0] : memref<8x64xf32, #tpu.memory_space<vmem>>, vector<8x64xf32>
    %1 = arith.truncf %0 : vector<8x64xf32> to vector<8x64xbf16>
    %c0_1 = arith.constant 0 : index
    %c0_2 = arith.constant 0 : index
    %2 = vector.load %arg1[%c0_1, %c0_2] : memref<64x512xbf16, #tpu.memory_space<vmem>>, vector<64x512xbf16>
    %cst = arith.constant dense<0.000000e+00> : vector<8x512xf32>
    %3 = tpu.matmul %1, %2, %cst {dimension_numbers = #tpu.dot_dimension_numbers<[1], [0], [0], [1], [0, 0, 1, 1], [], []>} : vector<8x64xbf16>, vector<64x512xbf16>, vector<8x512xf32> -> vector<8x512xf32>
    %c0_3 = arith.constant 0 : index
    %c0_4 = arith.constant 0 : index
    %4 = vector.load %arg2[%c0_3, %c0_4] : memref<1x512xf32, #tpu.memory_space<vmem>>, vector<1x512xf32>
    %5 = vector.broadcast %4 : vector<1x512xf32> to vector<8x512xf32>
    %6 = arith.addf %3, %5 : vector<8x512xf32>
    %c0_5 = arith.constant 0 : index
    %c0_6 = arith.constant 0 : index
    %7 = vector.load %arg3[%c0_5, %c0_6] : memref<8x512xf32, #tpu.memory_space<vmem>>, vector<8x512xf32>
    tpu.vector_store %arg3[%c0_5, %c0_6], %6 {strides = array<i32>} : memref<8x512xf32, #tpu.memory_space<vmem>>, vector<8x512xf32>,
    return
  }
}

</mosaic_0001>

<bundles_post_ra>
// kernel: forward.1
= control target key start
LH: loop header
LB: loop body
LE: loop exit
PB: predicated region body
PF: predicated region fallthrough
CT: control target
= control target key end

     0   :  { %v272_v1 = vmov 0   ;;  %vm135_vm0 = vcmask 523264   ;;  %v35_v19 = vlaneseq  ;;  %s359_s1 = inlined_call_operand.vmem [shape: bf16[64,512], index: 1, kind: input, shape index: {}]   ;;  %s360_s0 = inlined_call_operand.vmem [shape: f32[8,64], index: 0, kind: input, shape index: {}]   ;;  %s361_s2 = inlined_call_operand.vmem [shape: f32[1,512], index: 2, kind: input, shape index: {}]   ;;  %s362_s3 = inlined_call_operand.vmem [shape: f32[8,512], index: 3, kind: output, shape index: {}]  }
   0x1   :  { %v248_v0 = vld [vmem:[%s359_s1 + $0x4] ss:$16 sps:$4 sm:$0xff]   ;;  %171 = vmatprep.mubr.bf16.mxu0 %v272_v1  ;;  %212 = vmatprep.mubr.bf16.mxu1 %v272_v1  ;;  %v250_v2 = vld [vmem:[%s359_s1 + $0xc] ss:$16 sps:$4 sm:$0xff]   ;;  %v252_v3 = vld [vmem:[%s359_s1] ss:$16 sps:$4 sm:$0xff]  }
   0x2   :  { %139 = vmatprep.subr.bf16.mxu0 %v248_v0  ;;  %v253_v4 = vld [vmem:[%s359_s1 + $0x8] ss:$16 sps:$4 sm:$0xff]   ;;  %180 = vmatprep.subr.bf16.mxu1 %v250_v2  ;;  %v254_v5 = vld [vmem:[%s359_s1 + $0x24] ss:$16 sps:$4 sm:$0xff]   ;;  %v256_v6 = vld [vmem:[%s359_s1 + $0x2c] ss:$16 sps:$4 sm:$0xff]  }
   0x3   :  { %140 = vmatpush1.bf16.msra.mxu0 %v252_v3  ;;  %181 = vmatpush1.bf16.msra.mxu1 %v253_v4  ;;  %v258_v7 = vld [vmem:[%s359_s1 + $0x20] ss:$16 sps:$4 sm:$0xff]   ;;  %v259_v8 = vld [vmem:[%s359_s1 + $0x28] ss:$16 sps:$4 sm:$0xff]   ;;  %v260_v9 = vld [vmem:[%s359_s1 + $0x44] ss:$16 sps:$4 sm:$0xff]  }
   0x4   :  { %141 = vmatprep.subr.bf16.mxu0 %v254_v5  ;;  %182 = vmatprep.subr.bf16.mxu1 %v256_v6  ;;  %v262_v10 = vld [vmem:[%s359_s1 + $0x4c] ss:$16 sps:$4 sm:$0xff]   ;;  %v264_v11 = vld [vmem:[%s359_s1 + $0x40] ss:$16 sps:$4 sm:$0xff]   ;;  %v265_v12 = vld [vmem:[%s359_s1 + $0x48] ss:$16 sps:$4 sm:$0xff]  }
   0x5   :  { %v266_v13 = vld [vmem:[%s359_s1 + $0x64] ss:$16 sps:$4 sm:$0xff]   ;;  %v268_v14 = vld [vmem:[%s359_s1 + $0x6c] ss:$16 sps:$4 sm:$0xff]   ;;  %v270_v15 = vld [vmem:[%s359_s1 + $0x60] ss:$16 sps:$4 sm:$0xff]  }
   0x6   :  { %v271_v16 = vld [vmem:[%s359_s1 + $0x68] ss:$16 sps:$4 sm:$0xff]   ;;  %v15_v17 = vld [vmem:[%s360_s0] sm:$0xff]  ;;  %v36_v20 = vshrl.u32 %v35_v19, 7 }
   0x7   :  { %142 = vmatpush1.bf16.msra.mxu0 %v258_v7  ;;  %183 = vmatpush1.bf16.msra.mxu1 %v259_v8  ;;  %v16_v18 = vpack.c.bf16 %v15_v17, %v15_v17  ;;  %v33_v23 = vld [vmem:[%s361_s2] sm:$0xf] }
   0x8   :  { %143 = vmatprep.subr.bf16.mxu0 %v260_v9  ;;  %184 = vmatprep.subr.bf16.mxu1 %v262_v10  ;;  %v37_v21 = vsub.s32 0, %v36_v20  ;;  %v45_v22 = vsub.s32 2, %v36_v20  ;;  %v41_v24 = vsub.s32 1, %v36_v20  ;;  %v49_v25 = vsub.s32 3, %v36_v20 }
   0xa   :  { %v38_v26 = vrot.slane %v33_v23, %v37_v21  ;;  %v46_v27 = vrot.slane %v33_v23, %v45_v22  ;;  %v42_v28 = vrot.slane %v33_v23, %v41_v24  ;;  %v50_v29 = vrot.slane %v33_v23, %v49_v25 }
   0xb   :  { %144 = vmatpush1.bf16.msra.mxu0 %v264_v11  ;;  %185 = vmatpush1.bf16.msra.mxu1 %v265_v12 }
   0xc   :  { %145 = vmatprep.subr.bf16.mxu0 %v266_v13  ;;  %186 = vmatprep.subr.bf16.mxu1 %v268_v14 }
   0xf   :  { %146 = vmatpush1.bf16.msra.mxu0 %v270_v15  ;;  %187 = vmatpush1.bf16.msra.mxu1 %v271_v16 }
  0x12   :  { %245 = vmatmul.mubr.msk.bf16.vlgmr.msra.gmra.mrb[0].mxu0 %vm135_vm0, %v16_v18  ;;  %246 = vmatmul.mubr.msk.bf16.vlgmr.msra.gmra.mrb[0].mxu1 %vm135_vm0, %v16_v18 }
  0xe5   :  { %v173_v30 = vpop.f32.mrb[0].mxu0  ;;  %v214_v31 = vpop.f32.mrb[0].mxu1 }
  0xe6   :  { %v174_v32 = vadd.f32 %v173_v30, %v38_v26  ;;  %v215_v33 = vadd.f32 %v214_v31, %v46_v27  ;;  %v175_v34 = vpop.f32.mrb[1].mxu0  ;;  %v216_v35 = vpop.f32.mrb[1].mxu1 }
  0xe7   :  { %v176_v36 = vadd.f32 %v175_v34, %v42_v28  ;;  %v217_v37 = vadd.f32 %v216_v35, %v50_v29  ;;  %v177_v38 = vpop.f32.mrb[2].mxu0  ;;  %v218_v39 = vpop.f32.mrb[2].mxu1 }
  0xe8   :  { %221 = vst [vmem:[%s362_s3] sm:$0xff] %v174_v32  ;;  %223 = vst [vmem:[%s362_s3 + $0x10] sm:$0xff] %v215_v33  ;;  %v178_v40 = vpop.f32.mrb[3].mxu0  ;;  %v219_v41 = vpop.f32.mrb[3].mxu1 }
  0xe9   :  { %222 = vst [vmem:[%s362_s3 + $0x8] sm:$0xff] %v176_v36  ;;  %224 = vst [vmem:[%s362_s3 + $0x18] sm:$0xff] %v217_v37 }

</bundles_post_ra>
